<compile_context>
chip_gen: v7x
topology: tpu7x:2x2x1
jax: 0.10.0
libtpu: 0.0.40
codegen_flags: <defaults>
</compile_context>

<pallas_src>
import functools

import jax
import jax.numpy as jnp
from jax import lax
from jax.experimental import pallas as pl
from jax.experimental.pallas import tpu as pltpu

_MASK_VAL = -1e30  # large negative instead of -inf: keeps max/exp finite-safe


def _pick_tile(dim, preferred, quantum):
    """Largest tile <= preferred that divides dim and is a multiple of quantum.

    Falls back to the full extent (always legal for a BlockSpec) only if no such
    tile exists -- a VMEM hazard only for huge, awkwardly-sized dims.
    """
    if dim <= preferred:
        return dim
    t = (preferred // quantum) * quantum
    while t >= quantum:
        if dim % t == 0:
            return t
        t -= quantum
    return dim


def _vmem_limit(resident_bytes):
    """Explicit scoped-VMEM budget: resident tiles (already incl. double-buffering)
    x2 headroom, clamped to [32 MiB, 100 MiB]."""
    return int(min(100 << 20, max(32 << 20, 2 * resident_bytes + (4 << 20))))


# ---------------------------------------------------------------------------
# Kernel A: tiled matmul  y = x @ w   (QKV projection and the un-fused Wo)
# ---------------------------------------------------------------------------
def _matmul_kernel(x_ref, w_ref, o_ref):
    o_ref[...] = jnp.dot(
        x_ref[...], w_ref[...], preferred_element_type=jnp.float32
    ).astype(o_ref.dtype)


def _tiled_matmul(x2d, w, *, block_m=256, block_n=256):
    M, K = x2d.shape
    K2, N = w.shape
    assert K == K2
    bm = _pick_tile(M, block_m, 8)      # second-minor: multiple of 8 (sublane)
    bn = _pick_tile(N, block_n, 128)    # minor: multiple of 128 (lane)
    itemsize = jnp.dtype(x2d.dtype).itemsize
    resident = 2 * (bm * K + K * bn + bm * bn) * itemsize  # double-buffered tiles
    return pl.pallas_call(
        _matmul_kernel,
        out_shape=jax.ShapeDtypeStruct((M, N), x2d.dtype),
        grid_spec=pltpu.PrefetchScalarGridSpec(
            num_scalar_prefetch=0,
            grid=(M // bm, N // bn),
            in_specs=[
                pl.BlockSpec((bm, K), lambda i, j: (i, 0)),
                pl.BlockSpec((K, bn), lambda i, j: (0, j)),  # weight column slab
            ],
            out_specs=pl.BlockSpec((bm, bn), lambda i, j: (i, j)),
        ),
        compiler_params=pltpu.CompilerParams(
            dimension_semantics=("parallel", "parallel"),
            vmem_limit_bytes=_vmem_limit(resident)),
    )(x2d, w)


# ---------------------------------------------------------------------------
# Kernel B: flash attention (causal, online softmax), all heads per block
# ---------------------------------------------------------------------------
def _last_kv_block(qi, block_q, block_kv):
    # Last kv block index that intersects the causal region of q block `qi`.
    # The same formula drives both the compute gate and the K/V DMA clamp.
    return (qi * block_q + block_q - 1) // block_kv


def _flash_attn_kernel(q_ref, k_ref, v_ref, o_ref, m_sc, l_sc, acc_sc,
                       *, block_q, block_kv, n_head, head_dim):
    qi = pl.program_id(1)
    ki = pl.program_id(2)

    @pl.when(ki == 0)
    def _init():
        m_sc[...] = jnp.full(m_sc.shape, _MASK_VAL, m_sc.dtype)
        l_sc[...] = jnp.zeros(l_sc.shape, l_sc.dtype)
        acc_sc[...] = jnp.zeros(acc_sc.shape, acc_sc.dtype)

    # Causal: KV tiles entirely above the diagonal contribute nothing -> skip.
    @pl.when(ki <= _last_kv_block(qi, block_q, block_kv))
    def _compute():
        q = q_ref[0]                                   # (H, tq, hd); scale folded into Wq
        k = k_ref[0]                                   # (H, tkv, hd)
        v = v_ref[0]                                   # (H, tkv, hd)

        # Scores: contract head_dim directly (no explicit transpose), f32 accum.
        s = jnp.einsum("hqc,hkc->hqk", q, k,
                       preferred_element_type=jnp.float32)        # (H, tq, tkv)

        # Per-tile causal mask from grid offsets (O(tile^2), not O(S^2)).
        # TODO(synk): gate the mask off for tiles strictly below the diagonal
        # (pure VALU savings, mainly relevant on v5e).
        q_start = qi * block_q
        kv_start = ki * block_kv
        rows = q_start + lax.broadcasted_iota(jnp.int32, (block_q, block_kv), 0)
        cols = kv_start + lax.broadcasted_iota(jnp.int32, (block_q, block_kv), 1)
        s = jnp.where((cols <= rows)[None, :, :], s, _MASK_VAL)

        m_prev = m_sc[...][..., None]                              # (H, tq, 1)
        l_prev = l_sc[...][..., None]                              # (H, tq, 1)
        m_new = jnp.maximum(m_prev, jnp.max(s, axis=-1, keepdims=True))
        alpha = jnp.exp(m_prev - m_new)
        # TODO(synk): on v6e/v7x a bf16 exp (native bf16 EUP) halves EUP pressure
        # once the kernel becomes exp-bound; kept f32 here for accuracy.
        p = jnp.exp(s - m_new)                                     # (H, tq, tkv) f32

        l_new = alpha * l_prev + jnp.sum(p, axis=-1, keepdims=True)
        acc_sc[...] = alpha * acc_sc[...] + jnp.einsum(
            "hqk,hkc->hqc", p.astype(v.dtype), v,
            preferred_element_type=jnp.float32)                    # (H, tq, hd)
        m_sc[...] = m_new[..., 0]
        l_sc[...] = l_new[..., 0]

    @pl.when(ki == pl.num_programs(2) - 1)
    def _finalize():
        # Exact divide: runs once per q block, precision is essentially free here.
        ctx = (acc_sc[...] / l_sc[...][..., None]).astype(o_ref.dtype)  # (H, tq, hd)
        # Merge heads into one lane-dense (tq, D) block via static per-head stores.
        for h in range(n_head):
            o_ref[0, :, h * head_dim:(h + 1) * head_dim] = ctx[h]


def attention_forward(x, wqkv_t, wo_t, n_head, *,
                      block_q=256, block_kv=128, block_m=256, block_n=256):
    """Forward of Attention (eval mode): y = wo(causal_sdpa(wqkv(x))).

    x: (B, S, D); wqkv_t: (D, 3D); wo_t: (D, D).  Weights are pre-transposed so
    y = x @ W (i.e. wqkv_t == wqkv.weight.T, columns ordered [q | k | v] with the
    PyTorch (n_head, head_dim) sub-layout); no biases (matches the module).

    Per-generation tuning guidance: block_q ~256 on v5e/v7x, 384-512 on v6e
    (128 MiB VMEM); block_m/block_n 256 fills the 256x256 MXU on v6e/v7x.
    """
    B, S, D = x.shape
    assert D % n_head == 0
    hd = D // n_head

    # Fold the 1/sqrt(head_dim) attention scale into the Q columns of Wqkv once
    # at trace time (the weight is a constant) instead of scaling q per kv step.
    scale = 1.0 / (hd ** 0.5)
    col_scale = jnp.concatenate(
        [jnp.full((D,), scale, wqkv_t.dtype), jnp.ones((2 * D,), wqkv_t.dtype)])
    wqkv_scaled = wqkv_t * col_scale[None, :]

    # ---- QKV projection (kernel A) ----
    qkv = _tiled_matmul(x.reshape(B * S, D), wqkv_scaled,
                        block_m=block_m, block_n=block_n)          # (B*S, 3D)
    qkv = qkv.reshape(B, S, 3, n_head, hd)
    # TODO(synk): emit q/k/v directly in (B, H, S, hd) layout from the projection
    # kernel (grid over (batch, seq-tile, qkv, head) with per-head weight column
    # slabs) to remove these three XLA-level transposes (~6*B*S*D extra HBM traffic).
    q = jnp.transpose(qkv[:, :, 0], (0, 2, 1, 3))                  # (B, H, S, hd)
    k = jnp.transpose(qkv[:, :, 1], (0, 2, 1, 3))
    v = jnp.transpose(qkv[:, :, 2], (0, 2, 1, 3))

    # ---- Flash attention (kernel B) ----
    bq = _pick_tile(S, block_q, 8)
    bkv = _pick_tile(S, block_kv, 8)
    nq, nk = S // bq, S // bkv

    def kv_index_map(b, qi, ki):
        # Clamp fully-masked (future) kv tiles to the last useful one so their
        # block index does not change -> Pallas skips the redundant DMA.
        return (b, 0, jnp.minimum(ki, _last_kv_block(qi, bq, bkv)), 0)

    itemsize = jnp.dtype(x.dtype).itemsize
    resident = (2 * (n_head * bq * hd + 2 * n_head * bkv * hd) * itemsize  # q,k,v x2 buf
                + 2 * bq * D * itemsize                                    # out block
                + (2 * n_head * bq + n_head * bq * hd) * 4)                # f32 scratch

    kernel = functools.partial(_flash_attn_kernel, block_q=bq, block_kv=bkv,
                               n_head=n_head, head_dim=hd)
    ctx = pl.pallas_call(
        kernel,
        out_shape=jax.ShapeDtypeStruct((B, S, D), x.dtype),
        grid_spec=pltpu.PrefetchScalarGridSpec(
            num_scalar_prefetch=0,
            grid=(B, nq, nk),
            in_specs=[
                pl.BlockSpec((1, n_head, bq, hd), lambda b, qi, ki: (b, 0, qi, 0)),
                # TODO(synk): pipeline_mode=pl.Buffered(3) on K/V if profiling on
                # v5e shows exposed K/V DMA.
                pl.BlockSpec((1, n_head, bkv, hd), kv_index_map),
                pl.BlockSpec((1, n_head, bkv, hd), kv_index_map),
            ],
            out_specs=pl.BlockSpec((1, bq, D), lambda b, qi, ki: (b, qi, 0)),
            scratch_shapes=[
                pltpu.VMEM((n_head, bq), jnp.float32),       # running max m
                pltpu.VMEM((n_head, bq), jnp.float32),       # running sum l
                pltpu.VMEM((n_head, bq, hd), jnp.float32),   # output accumulator
            ],
        ),
        compiler_params=pltpu.CompilerParams(
            dimension_semantics=("parallel", "parallel", "arbitrary"),
            vmem_limit_bytes=_vmem_limit(resident)),
    )(q, k, v)

    # ---- Output projection (kernel A again: wo streamed in column slabs, so the
    #      full (D, D) weight is never VMEM-resident -- v7x 64 MiB budget) ----
    out = _tiled_matmul(ctx.reshape(B * S, D), wo_t,
                        block_m=block_m, block_n=block_n)
    return out.reshape(B, S, D)


# ---------------------------------------------------------------------------
# Pure-JAX reference replicating the PyTorch forward (eval mode), mirroring the
# kernel's compute-dtype handling (f32 accumulation, compute_dtype matmul inputs).
# ---------------------------------------------------------------------------
def _reference(x, wqkv_t, wo_t, n_head, compute_dtype):
    B, S, D = x.shape
    hd = D // n_head
    scale = 1.0 / (hd ** 0.5)
    xc = x.astype(compute_dtype)
    wq = wqkv_t.astype(compute_dtype)
    wo = wo_t.astype(compute_dtype)
    qkv = jnp.dot(xc, wq, preferred_element_type=jnp.float32).astype(compute_dtype)
    q, k, v = qkv[..., :D], qkv[..., D:2 * D], qkv[..., 2 * D:]
    q = q.reshape(B, S, n_head, hd).transpose(0, 2, 1, 3) * scale
    k = k.reshape(B, S, n_head, hd).transpose(0, 2, 1, 3)
    v = v.reshape(B, S, n_head, hd).transpose(0, 2, 1, 3)
    s = jnp.einsum("bhqc,bhkc->bhqk", q, k, preferred_element_type=jnp.float32)
    causal = jnp.tril(jnp.ones((S, S), dtype=bool))
    s = jnp.where(causal, s, -jnp.inf)
    p = jax.nn.softmax(s, axis=-1)
    o = jnp.einsum("bhqk,bhkc->bhqc", p.astype(compute_dtype), v,
                   preferred_element_type=jnp.float32)
    o = o.transpose(0, 2, 1, 3).reshape(B, S, D).astype(compute_dtype)
    return jnp.dot(o, wo, preferred_element_type=jnp.float32).astype(x.dtype)


if __name__ == "__main__":
    key = jax.random.PRNGKey(0)

    def _bf16_snap(a):
        # Snap data to bf16-representable values so MXU passes are exact under any
        # default matmul precision -> tight kernel-vs-reference agreement in f32.
        return a.astype(jnp.bfloat16).astype(a.dtype)

    # ---- Config 1: f32, multi-tile flash path (init / accumulate / causal skip /
    #      kv DMA clamp / finalize are all exercised). head_dim = 64. ----
    B, S, D, H = 2, 256, 128, 2
    k1, k2, k3, key = jax.random.split(key, 4)
    x = _bf16_snap(jax.random.normal(k1, (B, S, D), dtype=jnp.float32))
    wqkv_t = _bf16_snap(jax.random.normal(k2, (D, 3 * D), dtype=jnp.float32)
                        / (D ** 0.5))
    wo_t = _bf16_snap(jax.random.normal(k3, (D, D), dtype=jnp.float32)
                      / (D ** 0.5))

    out = attention_forward(x, wqkv_t, wo_t, H, block_q=128, block_kv=128)
    out = jax.block_until_ready(out)
    ref = _reference(x, wqkv_t, wo_t, H, jnp.float32)
    assert out.shape == (B, S, D)
    err = float(jnp.max(jnp.abs(out - ref)))
    assert err < 5e-3, f"f32 mismatch vs reference (max abs err {err})"

    # ---- Config 2: bf16 activations/weights, default 256-wide q tiles,
    #      asymmetric bq/bkv (256/128). head_dim = 64. ----
    B2, S2, D2, H2 = 2, 256, 256, 4
    k4, k5, k6, key = jax.random.split(key, 4)
    x2 = jax.random.normal(k4, (B2, S2, D2), dtype=jnp.float32).astype(jnp.bfloat16)
    wqkv2 = (jax.random.normal(k5, (D2, 3 * D2), dtype=jnp.float32)
             / (D2 ** 0.5)).astype(jnp.bfloat16)
    wo2 = (jax.random.normal(k6, (D2, D2), dtype=jnp.float32)
           / (D2 ** 0.5)).astype(jnp.bfloat16)

    out2 = attention_forward(x2, wqkv2, wo2, H2)   # defaults: block_q=256, block_kv=128
    out2 = jax.block_until_ready(out2)
    ref2 = _reference(x2, wqkv2, wo2, H2, jnp.bfloat16)
    assert out2.shape == (B2, S2, D2)
    err2 = float(jnp.max(jnp.abs(out2.astype(jnp.float32) - ref2.astype(jnp.float32))))
    assert err2 < 8e-2, f"bf16 mismatch vs reference (max abs err {err2})"

    # TODO(synk): kv_cache update path (kv_cache is None in the module's eval
    # forward), the optional explicit attn mask, and training-mode dropouts are
    # not implemented.
    print("KERNEL_OK")
</pallas_src>

<mosaic_0001>
module attributes {stable_mosaic.version = 11 : i64} {
  func.func @_matmul_kernel(%arg0: i32, %arg1: i32, %arg2: memref<256x128xf32, #tpu.memory_space<vmem>>, %arg3: memref<128x128xf32, #tpu.memory_space<vmem>>, %arg4: memref<256x128xf32, #tpu.memory_space<vmem>>) attributes {dimension_semantics = [#tpu.dimension_semantics<parallel>, #tpu.dimension_semantics<parallel>], iteration_bounds = array<i64: 2, 3>, scalar_prefetch = 0 : i64, scratch_operands = 0 : i64, tpu.core_type = #tpu.core_type<tc>, window_params = [{transform_indices = @transform_0, window_bounds = array<i64: 256, 128>}, {transform_indices = @transform_1, window_bounds = array<i64: 128, 128>}, {transform_indices = @transform_2, window_bounds = array<i64: 256, 128>}]} {
    %c0 = arith.constant 0 : index
    %c0_0 = arith.constant 0 : index
    %0 = vector.load %arg2[%c0, %c0_0] : memref<256x128xf32, #tpu.memory_space<vmem>>, vector<256x128xf32>
    %c0_1 = arith.constant 0 : index
    %c0_2 = arith.constant 0 : index
    %1 = vector.load %arg3[%c0_1, %c0_2] : memref<128x128xf32, #tpu.memory_space<vmem>>, vector<128x128xf32>
    %cst = arith.constant dense<0.000000e+00> : vector<256x128xf32>
    %2 = tpu.matmul %0, %1, %cst {dimension_numbers = #tpu.dot_dimension_numbers<[1], [0], [0], [1], [0, 0, 1, 1], [], []>} : vector<256x128xf32>, vector<128x128xf32>, vector<256x128xf32> -> vector<256x128xf32>
    %c0_3 = arith.constant 0 : index
    %c0_4 = arith.constant 0 : index
    %3 = vector.load %arg4[%c0_3, %c0_4] : memref<256x128xf32, #tpu.memory_space<vmem>>, vector<256x128xf32>
    tpu.vector_store %arg4[%c0_3, %c0_4], %2 {strides = array<i32>} : memref<256x128xf32, #tpu.memory_space<vmem>>, vector<256x128xf32>,
    return
  }
  func.func @transform_0(%arg0: i32, %arg1: i32) -> (i32, i32) {
    %c0_i32 = arith.constant 0 : i32
    %c0_i32_0 = arith.constant 0 : i32
    return %arg0, %c0_i32 : i32, i32
  }
  func.func @transform_1(%arg0: i32, %arg1: i32) -> (i32, i32) {
    %c0_i32 = arith.constant 0 : i32
    %c0_i32_0 = arith.constant 0 : i32
    return %c0_i32, %arg1 : i32, i32
  }
  func.func @transform_2(%arg0: i32, %arg1: i32) -> (i32, i32) {
    %c0_i32 = arith.constant 0 : i32
    return %arg0, %arg1 : i32, i32
  }
}

</mosaic_0001>

<bundles_post_ra>
// kernel: tpu_custom_call.1
= control target key start
LH: loop header
LB: loop body
LE: loop exit
PB: predicated region body
PF: predicated region fallthrough
CT: control target
= control target key end

     0   :  { %s1653_s0 = inlined_call_operand.hbm [shape: f32[512,128], index: 0, kind: input, shape index: {}]   ;;  %s1654_s1 = inlined_call_operand.hbm [shape: f32[128,384], index: 1, kind: input, shape index: {}]   ;;  %s1655_s2 = inlined_call_operand.hbm [shape: f32[512,384], index: 2, kind: output, shape index: {}]  }
   0x1   :  { %1669 = sst [smem:[#allocation17_spill]] %s1653_s0 }
   0x2   :  { %1670 = sst [smem:[#allocation18_spill]] %s1655_s2 }
   0x3   :  { %7 = vsyncpa [#allocation3], 0 }
   0x4   :  { %9 = vsyncpa [#allocation3 + $0x1], 0 }
   0x5   :  { %10 = vsyncpa [#allocation6], 0 }
   0x6   :  { %12 = vsyncpa [#allocation6 + $0x1], 0 }
   0x7   :  { %13 = vsyncpa [#allocation4], 0 }
   0x8   :  { %15 = vsyncpa [#allocation4 + $0x1], 0  ;;  %s1217_s9 = smov 0   ;;  %s1219_s10 = smov 0  }
   0x9   :  { %s1221_s11 = smov 0   ;;  %s1223_s12 = smov 0  }
   0xa   :  { %s1225_s13 = smov 0   ;;  %s1227_s14 = smov 0  }
   0xb   :  { %s1229_s15 = smov 0   ;;  %s1231_s16 = smov 0  }
   0xc   :  { %s1233_s17 = smov 0   ;;  %s1235_s18 = smov 0  }
   0xd   :  { %s1237_s19 = smov 0   ;;  %s1239_s20 = smov 0  }
   0xe   :  { %s1241_s21 = smov 0   ;;  %s1243_s22 = smov 0  }
   0xf LB: > { %1671 = sst [smem:[#allocation11_spill]] %s1175_s18  ;;  %s647_s23 = sadd.s32 4294967295, %s1191_s22   ;;  %s1191_s22 = sphi %s1243_s22, %s21_s22   ;;  %s1187_s21 = sphi %s1241_s21, %s1706_s21   ;;  %s1183_s20 = sphi %s1239_s20, %s1717_s20   ;;  %s1179_s19 = sphi %s1237_s19, %s1704_s19   ;;  %s1175_s18 = sphi %s1235_s18, %s1716_s18   ;;  %s1171_s17 = sphi %s1233_s17, %s1715_s17   ;;  %s1167_s16 = sphi %s1231_s16, %s1714_s16   ;;  %s1163_s15 = sphi %s1229_s15, %s1713_s15   ;;  %s1159_s14 = sphi %s1227_s14, %s1712_s14   ;;  %s1155_s13 = sphi %s1225_s13, %s1711_s13   ;;  %s1151_s12 = sphi %s1223_s12, %s1710_s12   ;;  %s1147_s11 = sphi %s1221_s11, %s1709_s11   ;;  %s1143_s10 = sphi %s1219_s10, %s1708_s10   ;;  %s1139_s9 = sphi %s1217_s9, %s1707_s9  }
  0x10   : > { %1672 = sst [smem:[#allocation12_spill]] %s1187_s21  ;;  %s33_s24 = sadd.s32 1, %s1187_s21 }
  0x11   : > { %p47_p0 = scmp.ne.s32.totalorder %s1171_s17, %s1167_s16  ;;  %p1657_p1 = scmp.eq.s32.totalorder %s1191_s22, 0 }
  0x12   : > { %p53_p2 = scmp.ne.s32.totalorder %s1167_s16, %s1163_s15  ;;  %p1292_p3 = scmp.eq.s32.totalorder %s647_s23, 0 }
  0x13   : > { %p1296_p4 = scmp.eq.s32.totalorder %s647_s23, 5  ;;  %p49_p5 = por %p1657_p1, %p47_p0 }
  0x14   : > { %p1304_p6 = por %p1292_p3, %p53_p2  ;;  %p1656_p7 = scmp.lt.s32.totalorder %s1191_s22, 6 }
  0x15   : > { %s1674_s27 = scalar_select %p1296_p4, 1, 0 }
  0x16   : > { %s1675_s28 = scalar_select %p1304_p6, 1, 0 }
  0x17   : > { %s131_s29 = sand.u32 1, %s1171_s17   ;;  %s666_s30 = sshll.u32 %s1187_s21, 12 }
  0x18   : > { %s651_s3 = sshll.u32 %s131_s29, 8  ;;  %s1676_s0 = sld [smem:[#allocation17_spill]] }
  0x19   : > { %s135_s7 = scalar_lea.vmem [#allocation2], %s651_s3  ;;  %p1318_p8 = pnand %p1656_p7, %p49_p5 }
  0x1a   : > { %s142_s8 = sshll.u32 %s135_s7, 4  ;;  %s1324_s23 = scalar_lea.sflag [#allocation3], %s131_s29  ;;  %s1322_s8 = int_to_ptr.vmem [resolvable:$true] %s142_s8 }
  0x1b   : > { %p983_p10 = pneg %p1318_p8 }
  0x1e   : > { %s1314_s6 = scalar_lea.hbm %s1676_s0, %s666_s30  ;;  %s986_s5 = scalar_lea.hbm %s1676_s0, 8192 }
  0x1f   : > { %s981_s4 = scalar_lea.hbm %s1314_s6, 4096  ;;  %p987_p13 = scmp.lt.u32.totalorder %s1314_s6, %s1676_s0 }
  0x20   : > { %p982_p9 = scmp.ne.s32.totalorder %s1314_s6, %s981_s4  ;;  %p988_p0 = scmp.lt.u32.totalorder %s986_s5, %s981_s4 }
  0x21   : > { %p990_p5 = scmp.lt.u32.totalorder %s981_s4, %s1314_s6 }
  0x22   : > { %p984_p11 = pnand %p983_p10, %p982_p9  ;;  %p989_p2 = por %p988_p0, %p987_p13 }
  0x24   : > { %p985_p12 = pneg %p984_p11  ;;  %p991_p7 = por %p990_p5, %p989_p2 }
  0x26   : > { %p992_p1 = pnand %p991_p7, %p985_p12 }
  0x28   : > { %995 = shalt.err (!%p992_p1)
}
  0x29   : > { %s996_s29 = scalar_lea.vmem %s1322_s8, 4096  ;;  %s1193_s30 = smov [#allocation2]  }
  0x2a   : > { %p997_p9 = scmp.ne.s32.totalorder %s1322_s8, %s996_s29  ;;  %s1001_s3 = sshll.u32 %s1193_s30, 4  ;;  %s1002_s3 = int_to_ptr.vmem [resolvable:$false] %s1001_s3 }
  0x2b   : > { %s1003_s25 = scalar_lea.vmem %s1002_s3, 8192  ;;  %p1004_p4 = scmp.lt.s32.totalorder %s1322_s8, %s1002_s3 }
  0x2c   : > { %p999_p11 = pnand %p997_p9, %p983_p10  ;;  %p1005_p13 = scmp.lt.s32.totalorder %s1003_s25, %s996_s29 }
  0x2e   : > { %p1000_p6 = pneg %p999_p11  ;;  %p1006_p0 = por %p1005_p13, %p1004_p4 }
  0x30   : > { %p1007_p2 = pnand %p1006_p0, %p1000_p6 }
  0x32   : > { %1010 = shalt.err (!%p1007_p2)
}
  0x33   : > { %s1659_s4 = smov 128   ;;  %s1660_s5 = smov 8  }
  0x34   : > { %853 = dma.hbm_to_vmem [thread:$0]  (!%p1318_p8), %s1314_s6, 4096, %s1322_s8, %s1324_s23, %s1659_s4, %s1659_s4, %s1660_s5  }
  0x35   : > { %p656_p1 = scmp.ge.s32.totalorder %s1191_s22, 1  ;;  %p170_p4 = scmp.lt.s32.totalorder %s1191_s22, 7 }
  0x36   : > { %s648_s29 = sadd.s32 4294967294, %s1191_s22   ;;  %s30_s30 = sadd.s32 1, %s1183_s20 }
  0x37   : > { %p1357_p6 = pnand %p656_p1, %p170_p4  ;;  %s66_s3 = sadd.s32 1, %s1159_s14 }
  0x38   : > { %p31_p7 = scmp.ge.s32.totalorder %s30_s30, 3  ;;  %p73_p10 = scmp.ne.s32.totalorder %s1159_s14, %s1155_s13 }
  0x39   : > { %p79_p12 = scmp.ne.s32.totalorder %s1155_s13, %s1151_s12  ;;  %s94_s15 = sadd.s32 1, %s1147_s11 }
  0x3a   : > { %s1719_s30 = smov (%p31_p7, %s30_s30), 0  ;;  %s1721_s24 = smov (!%p31_p7, %s33_s24), %s1187_s21 }
  0x3b   : > { %1679 = sst [smem:[#allocation13_spill]] %s1719_s30  ;;  %s63_s6 = ssub.s32 %s1183_s20, %s1719_s30 }
  0x3c   : > { %p1680_p8 = scmp.eq.s32.totalorder %s1191_s22, 0  ;;  %p35_p9 = scmp.ge.s32.totalorder %s1721_s24, 2 }
  0x3d   : > { %p64_p11 = scmp.eq.s32.totalorder %s63_s6, 0  ;;  %p1384_p13 = por %p79_p12, %p1292_p3 }
  0x3e   : > { %p1378_p5 = por %p73_p10, %p1680_p8  ;;  %p104_p0 = scmp.ne.s32.totalorder %s1147_s11, %s1143_s10 }
  0x3f   : > { %s1682_s12 = scalar_select %p1384_p13, 1, 0 }
  0x40   : > { %s1723_s24 = smov (%p35_p9, %s1721_s24), 0  ;;  %p1685_p2 = scmp.ne.s32.totalorder %s1674_s27, 0 }
  0x41   : > { %1683 = sst [smem:[#allocation14_spill]] %s1723_s24  ;;  %s37_s25 = ssub.s32 %s1187_s21, %s1723_s24 }
  0x42   : > { %s1393_s23 = scalar_select %p64_p11, %s1159_s14, %s66_s3  }
  0x43   : > { %p1399_p1 = por %p1685_p2, %p104_p0  ;;  %p38_p4 = scmp.eq.s32.totalorder %s37_s25, 0 }
  0x44   : > { %1684 = sst [smem:[#allocation15_spill]] %s1393_s23  ;;  %s91_s26 = sor.u32 %s63_s6, %s37_s25 }
  0x45   : > { %s1686_s4 = scalar_select %p1399_p1, 1, 0 }
  0x46   : > { %p92_p3 = scmp.eq.s32.totalorder %s91_s26, 0  ;;  %p110_p7 = scmp.ne.s32.totalorder %s1143_s10, %s1139_s9 }
  0x47   : > { %1687 = sst [smem:[#allocation16_spill]] %s1686_s4  ;;  %s1688_s5 = sadd.s32 1, %s1171_s17 }
  0x48   : > { %s1408_s0 = scalar_select %p38_p4, %s1171_s17, %s1688_s5  }
  0x49   : > { %s1411_s30 = scalar_select %p92_p3, %s1147_s11, %s94_s15  }
  0x4a   : > { %p111_p10 = scmp.eq.s32.totalorder %s648_s29, 5  ;;  %s152_s3 = sand.u32 1, %s1159_s14  }
  0x4b   : > { %s654_s23 = sshll.u32 %s152_s3, 7  ;;  %s655_s24 = sshll.u32 %s1183_s20, 7 }
  0x4c   : > { %p1414_p12 = por %p111_p10, %p110_p7  ;;  %s156_s21 = scalar_lea.vmem [#allocation5], %s654_s23 }
  0x4d   : > { %s162_s2 = sshll.u32 %s156_s21, 4  ;;  %s1422_s6 = scalar_lea.hbm %s1654_s1, %s655_s24  ;;  %s1424_s2 = int_to_ptr.vmem [resolvable:$true] %s162_s2 }
  0x4e   : > { %s1689_s27 = scalar_select %p1414_p12, 1, 0 }
  0x4f   : > { %p1690_p8 = scmp.lt.s32.totalorder %s1191_s22, 6  ;;  %s1434_s21 = scalar_lea.sflag [#allocation6], %s152_s3 }
  0x50   : > { %s1011_s29 = scalar_lea.hbm %s1422_s6, 2048  ;;  %s1016_s4 = scalar_lea.hbm %s1654_s1, 6144 }
  0x51   : > { %p1430_p9 = pnand %p1690_p8, %p1378_p5  ;;  %p1012_p11 = scmp.ne.s32.totalorder %s1422_s6, %s1011_s29 }
  0x52   : > { %p1017_p5 = scmp.lt.u32.totalorder %s1422_s6, %s1654_s1  ;;  %p1018_p3 = scmp.lt.u32.totalorder %s1016_s4, %s1011_s29 }
  0x53   : > { %p1013_p0 = pneg %p1430_p9  ;;  %p1020_p10 = scmp.lt.u32.totalorder %s1011_s29, %s1422_s6 }
  0x54   : > { %p1019_p7 = por %p1018_p3, %p1017_p5 }
  0x55   : > { %p1014_p2 = pnand %p1013_p0, %p1012_p11 }
  0x56   : > { %p1021_p8 = por %p1020_p10, %p1019_p7 }
  0x57   : > { %p1015_p4 = pneg %p1014_p2 }
  0x59   : > { %p1022_p12 = pnand %p1021_p8, %p1015_p4 }
  0x5b   : > { %1025 = shalt.err (!%p1022_p12)
}
  0x5c   : > { %s1026_s23 = scalar_lea.vmem %s1424_s2, 2048  ;;  %s1196_s25 = smov [#allocation5]  }
  0x5d   : > { %p1027_p11 = scmp.ne.s32.totalorder %s1424_s2, %s1026_s23  ;;  %s1031_s26 = sshll.u32 %s1196_s25, 4  ;;  %s1032_s26 = int_to_ptr.vmem [resolvable:$false] %s1031_s26 }
  0x5e   : > { %s1033_s3 = scalar_lea.vmem %s1032_s26, 4096  ;;  %p1034_p13 = scmp.lt.s32.totalorder %s1424_s2, %s1032_s26 }
  0x5f   : > { %p1029_p2 = pnand %p1027_p11, %p1013_p0  ;;  %p1035_p5 = scmp.lt.s32.totalorder %s1033_s3, %s1026_s23 }
  0x61   : > { %p1030_p1 = pneg %p1029_p2  ;;  %p1036_p3 = por %p1035_p5, %p1034_p13 }
  0x63   : > { %p1037_p7 = pnand %p1036_p3, %p1030_p1 }
  0x65   : > { %1040 = shalt.err (!%p1037_p7)
}
  0x66   : > { %s1197_s29 = smov 384   ;;  %s1692_s18 = smov 8  }
  0x67   : > { %s1693_s24 = smov 128   ;;  %174 = sbr.rel (%p1357_p6) target bundleno = 407 (0x197), region = 28 }
  0x68   : > { %856 = dma.hbm_to_vmem [thread:$0]  (!%p1430_p9), %s1422_s6, 2048, %s1424_s2, %s1434_s21, %s1197_s29, %s1693_s24, %s1692_s18  }
  0x69   : > { %s176_s4 = sand.u32 (!%p1357_p6), 1, %s1167_s16   ;;  %p1694_p13 = scmp.ne.s32.totalorder (!%p1357_p6), %s1675_s28, 0 }
  0x6a   : > { %s657_s15 = sshll.u32 (!%p1357_p6), %s176_s4, 8  ;;  %s177_s8 = scalar_lea.sflag (!%p1357_p6), [#allocation3], %s176_s4 }
  0x6b   : > { %s1467_s23 = scalar_lea.vmem (!%p1357_p6), [#allocation2], %s657_s15 }
  0x6e   : > { %1126 = dma.done.wait (%p1694_p13), %s177_s8, 4096  }
  0x6f   : > { %1128 = vsyncadd (%p1694_p13), %s177_s8, 4294963200  ;;  %s185_s5 = sand.u32 1, %s1155_s13   ;;  %p1695_p6 = scmp.ne.s32.totalorder %s1682_s12, 0 }
  0x70   : > { %s658_s25 = sshll.u32 %s185_s5, 7  ;;  %s186_s2 = scalar_lea.sflag [#allocation6], %s185_s5 }
  0x71   : > { %s1474_s6 = scalar_lea.vmem [#allocation5], %s658_s25 }
  0x72   : > { %1130 = dma.done.wait (%p1695_p6), %s186_s2, 2048  }
  0x73   : > { %1132 = vsyncadd (%p1695_p6), %s186_s2, 4294965248  ;;  %v249_v0 = vld [vmem:[%s1474_s6] sm:$0xff]  ;;  %v250_v1 = vld [vmem:[%s1474_s6 + $0x8] sm:$0xff]  ;;  %s212_s28 = sand.u32 1, %s1143_s10   ;;  %s1696_s21 = sld [smem:[#allocation11_spill]] }
  0x74   : > { %v251_v2 = vld [vmem:[%s1474_s6 + $0x10] sm:$0xff]  ;;  %v795_v3 = vpack.c.bf16 %v250_v1, %v249_v0  ;;  %v252_v4 = vld [vmem:[%s1474_s6 + $0x18] sm:$0xff]  ;;  %v253_v6 = vld [vmem:[%s1474_s6 + $0x20] sm:$0xff]  ;;  %s659_s7 = sshll.u32 %s212_s28, 8  ;;  %s843_s26 = smul.u32 96, %s1179_s19 }
  0x75   : > { %v799_v5 = vpack.c.bf16 %v252_v4, %v251_v2  ;;  %v254_v7 = vld [vmem:[%s1474_s6 + $0x28] sm:$0xff]  ;;  %v217_v9 = vld [vmem:[%s1467_s23] sm:$0xff]  ;;  %v255_v11 = vld [vmem:[%s1474_s6 + $0x30] sm:$0xff]  ;;  %s1531_s12 = scalar_lea.vmem [#allocation7], %s659_s7  ;;  %s1697_s18 = sld [smem:[#allocation16_spill]] }
  0x76   : > { %796 = vmatprep.subr.bf16.mxu0 %v795_v3  ;;  %827 = vmatprep.subr.bf16.mxu1 %v795_v3  ;;  %v803_v8 = vpack.c.bf16 %v254_v7, %v253_v6  ;;  %v233_v10 = vld [vmem:[%s1467_s23 + $0x80] sm:$0xff]  ;;  %v256_v12 = vld [vmem:[%s1474_s6 + $0x38] sm:$0xff]  ;;  %v258_v15 = vld [vmem:[%s1474_s6 + $0x48] sm:$0xff]  ;;  %s538_s29 = sshll.u32 %s1531_s12, 4  ;;  %s1698_s15 = sld [smem:[#allocation18_spill]]  ;;  %s1569_s29 = int_to_ptr.vmem [resolvable:$true] %s538_s29 }
  0x77   : > { %798 = vmatpush3.bf16.msra.mxu0 %v795_v3  ;;  %835 = vmatpush3.bf16.msra.mxu1 %v795_v3  ;;  %v807_v13 = vpack.c.bf16 %v256_v12, %v255_v11  ;;  %v257_v14 = vld [vmem:[%s1474_s6 + $0x40] sm:$0xff]  ;;  %v259_v17 = vld [vmem:[%s1474_s6 + $0x50] sm:$0xff]  ;;  %v260_v18 = vld [vmem:[%s1474_s6 + $0x58] sm:$0xff]  ;;  %s1577_s5 = scalar_lea.sflag [#allocation4], %s212_s28  ;;  %s1041_s25 = scalar_lea.vmem %s1569_s29, 4096 }
  0x78   : > { %800 = vmatprep.subr.bf16.mxu0 %v799_v5  ;;  %828 = vmatprep.subr.bf16.mxu1 %v799_v5  ;;  %v811_v16 = vpack.c.bf16 %v258_v15, %v257_v14  ;;  %v815_v19 = vpack.c.bf16 %v260_v18, %v259_v17  ;;  %v261_v20 = vld [vmem:[%s1474_s6 + $0x60] sm:$0xff]  ;;  %v262_v21 = vld [vmem:[%s1474_s6 + $0x68] sm:$0xff]  ;;  %v263_v23 = vld [vmem:[%s1474_s6 + $0x70] sm:$0xff]  ;;  %p1042_p1 = scmp.ne.s32.totalorder %s1569_s29, %s1041_s25  ;;  %s1198_s2 = smov [#allocation7]  }
  0x79   : > { %747 = vmatprep.mubr.f32.mxu0 %v217_v9  ;;  %771 = vmatprep.mubr.f32.mxu1 %v233_v10  ;;  %v819_v22 = vpack.c.bf16 %v262_v21, %v261_v20  ;;  %v264_v24 = vld [vmem:[%s1474_s6 + $0x78] sm:$0xff]  ;;  %v218_v26 = vld [vmem:[%s1467_s23 + $0x8] sm:$0xff]  ;;  %v219_v28 = vld [vmem:[%s1467_s23 + $0x10] sm:$0xff]  ;;  %s535_s3 = sadd.s32 %s1696_s21, %s843_s26  ;;  %s1045_s6 = sshll.u32 %s1198_s2, 4  ;;  %s1046_s6 = int_to_ptr.vmem [resolvable:$false] %s1045_s6 }
  0x7a   : > { %v823_v25 = vpack.c.bf16 %v264_v24, %v263_v23  ;;  %v234_v27 = vld [vmem:[%s1467_s23 + $0x88] sm:$0xff]  ;;  %v235_v29 = vld [vmem:[%s1467_s23 + $0x90] sm:$0xff]  ;;  %v220_v30 = vld [vmem:[%s1467_s23 + $0x18] sm:$0xff]  ;;  %s663_s19 = sshll.u32 %s535_s3, 7  ;;  %s1047_s7 = scalar_lea.vmem %s1046_s6, 8192 }
  0x7b   : > { %802 = vmatpush3.bf16.msra.mxu0 %v799_v5  ;;  %836 = vmatpush3.bf16.msra.mxu1 %v799_v5  ;;  %v236_v31 = vld [vmem:[%s1467_s23 + $0x98] sm:$0xff]  ;;  %v221_v32 = vld [vmem:[%s1467_s23 + $0x20] sm:$0xff]  ;;  %v222_v34 = vld [vmem:[%s1467_s23 + $0x28] sm:$0xff]  ;;  %p1700_p12 = scmp.ne.s32.totalorder %s1697_s18, 0  ;;  %p1048_p4 = scmp.lt.s32.totalorder %s1569_s29, %s1046_s6 }
  0x7c   : > { %804 = vmatprep.subr.bf16.mxu0 %v803_v8  ;;  %829 = vmatprep.subr.bf16.mxu1 %v803_v8  ;;  %v237_v33 = vld [vmem:[%s1467_s23 + $0xa0] sm:$0xff]  ;;  %v238_v35 = vld [vmem:[%s1467_s23 + $0xa8] sm:$0xff]  ;;  %v223_v36 = vld [vmem:[%s1467_s23 + $0x30] sm:$0xff]  ;;  %s1699_s8 = smov %s1698_s15  ;;  %p1049_p10 = scmp.lt.s32.totalorder %s1047_s7, %s1041_s25 }
  0x7d   : > { %v239_v37 = vld [vmem:[%s1467_s23 + $0xb0] sm:$0xff]  ;;  %v224_v38 = vld [vmem:[%s1467_s23 + $0x38] sm:$0xff]  ;;  %v225_v40 = vld [vmem:[%s1467_s23 + $0x40] sm:$0xff]  ;;  %p1043_p9 = pnand %p1042_p1, %p1700_p12 }
  0x7e   : > { %v240_v39 = vld [vmem:[%s1467_s23 + $0xb8] sm:$0xff]  ;;  %v241_v41 = vld [vmem:[%s1467_s23 + $0xc0] sm:$0xff]  ;;  %v226_v42 = vld [vmem:[%s1467_s23 + $0x48] sm:$0xff]  ;;  %p1050_p8 = por %p1049_p10, %p1048_p4 }
  0x7f   : > { %806 = vmatpush3.bf16.msra.mxu0 %v803_v8  ;;  %837 = vmatpush3.bf16.msra.mxu1 %v803_v8  ;;  %v242_v43 = vld [vmem:[%s1467_s23 + $0xc8] sm:$0xff]  ;;  %v227_v44 = vld [vmem:[%s1467_s23 + $0x50] sm:$0xff]  ;;  %v228_v46 = vld [vmem:[%s1467_s23 + $0x58] sm:$0xff]  ;;  %p1044_p0 = pneg %p1043_p9 }
  0x80   : > { %808 = vmatprep.subr.bf16.mxu0 %v807_v13  ;;  %830 = vmatprep.subr.bf16.mxu1 %v807_v13  ;;  %v243_v45 = vld [vmem:[%s1467_s23 + $0xd0] sm:$0xff]  ;;  %v244_v47 = vld [vmem:[%s1467_s23 + $0xd8] sm:$0xff]  ;;  %v229_v48 = vld [vmem:[%s1467_s23 + $0x60] sm:$0xff] }
  0x81   : > { %v245_v49 = vld [vmem:[%s1467_s23 + $0xe0] sm:$0xff]  ;;  %v230_v50 = vld [vmem:[%s1467_s23 + $0x68] sm:$0xff]  ;;  %v231_v52 = vld [vmem:[%s1467_s23 + $0x70] sm:$0xff]  ;;  %p1051_p11 = pnand %p1050_p8, %p1044_p0 }
  0x82   : > { %v246_v51 = vld [vmem:[%s1467_s23 + $0xe8] sm:$0xff]  ;;  %v247_v53 = vld [vmem:[%s1467_s23 + $0xf0] sm:$0xff]  ;;  %v232_v54 = vld [vmem:[%s1467_s23 + $0x78] sm:$0xff] }
  0x83   : > { %810 = vmatpush3.bf16.msra.mxu0 %v807_v13  ;;  %838 = vmatpush3.bf16.msra.mxu1 %v807_v13  ;;  %v248_v55 = vld [vmem:[%s1467_s23 + $0xf8] sm:$0xff]  ;;  %s1567_s23 = scalar_lea.hbm %s1698_s15, %s663_s19 }
  0x84   : > { %812 = vmatprep.subr.bf16.mxu0 %v811_v16  ;;  %831 = vmatprep.subr.bf16.mxu1 %v811_v16 }
  0x87   : > { %814 = vmatpush3.bf16.msra.mxu0 %v811_v16  ;;  %839 = vmatpush3.bf16.msra.mxu1 %v811_v16 }
  0x88   : > { %816 = vmatprep.subr.bf16.mxu0 %v815_v19  ;;  %832 = vmatprep.subr.bf16.mxu1 %v815_v19 }
  0x8b   : > { %818 = vmatpush3.bf16.msra.mxu0 %v815_v19  ;;  %840 = vmatpush3.bf16.msra.mxu1 %v815_v19 }
  0x8c   : > { %820 = vmatprep.subr.bf16.mxu0 %v819_v22  ;;  %833 = vmatprep.subr.bf16.mxu1 %v819_v22 }
  0x8f   : > { %822 = vmatpush3.bf16.msra.mxu0 %v819_v22  ;;  %841 = vmatpush3.bf16.msra.mxu1 %v819_v22 }
  0x90   : > { %824 = vmatprep.subr.bf16.mxu0 %v823_v25  ;;  %834 = vmatprep.subr.bf16.mxu1 %v823_v25 }
  0x93   : > { %826 = vmatpush3.bf16.msra.mxu0 %v823_v25  ;;  %842 = vmatpush3.bf16.msra.mxu1 %v823_v25 }
  0x96   : > { %748 = vmatmul.mubr.f32.vlgmr.msra.gmra.mrb[0].mxu0 %v218_v26  ;;  %772 = vmatmul.mubr.f32.vlgmr.msra.gmra.mrb[0].mxu1 %v234_v27 }
  0x97   : > { %750 = vmatprep.mubr.f32.mxu0 %v219_v28  ;;  %774 = vmatprep.mubr.f32.mxu1 %v235_v29 }
  0x9a   : > { %751 = vmatmul.mubr.f32.gmra.mrb[2].mxu0 %v220_v30  ;;  %775 = vmatmul.mubr.f32.gmra.mrb[2].mxu1 %v236_v31 }
  0x9b   : > { %753 = vmatprep.mubr.f32.mxu0 %v221_v32  ;;  %777 = vmatprep.mubr.f32.mxu1 %v237_v33 }
  0x9e   : > { %754 = vmatmul.mubr.f32.gmra.mrb[4].mxu0 %v222_v34  ;;  %778 = vmatmul.mubr.f32.gmra.mrb[4].mxu1 %v238_v35 }
  0x9f   : > { %756 = vmatprep.mubr.f32.mxu0 %v223_v36  ;;  %780 = vmatprep.mubr.f32.mxu1 %v239_v37 }
  0xa2   : > { %757 = vmatmul.mubr.f32.gmra.mrb[6].mxu0 %v224_v38  ;;  %781 = vmatmul.mubr.f32.gmra.mrb[6].mxu1 %v240_v39 }
  0xa3   : > { %759 = vmatprep.mubr.f32.mxu0 %v225_v40  ;;  %783 = vmatprep.mubr.f32.mxu1 %v241_v41 }
  0xa6   : > { %760 = vmatmul.mubr.f32.gmra.mrb[8].mxu0 %v226_v42  ;;  %784 = vmatmul.mubr.f32.gmra.mrb[8].mxu1 %v242_v43 }
  0xa7   : > { %762 = vmatprep.mubr.f32.mxu0 %v227_v44  ;;  %786 = vmatprep.mubr.f32.mxu1 %v243_v45 }
  0xaa   : > { %763 = vmatmul.mubr.f32.gmra.mrb[10].mxu0 %v228_v46  ;;  %787 = vmatmul.mubr.f32.gmra.mrb[10].mxu1 %v244_v47 }
  0xab   : > { %765 = vmatprep.mubr.f32.mxu0 %v229_v48  ;;  %789 = vmatprep.mubr.f32.mxu1 %v245_v49 }
  0xae   : > { %766 = vmatmul.mubr.f32.gmra.mrb[12].mxu0 %v230_v50  ;;  %790 = vmatmul.mubr.f32.gmra.mrb[12].mxu1 %v246_v51 }
  0xaf   : > { %768 = vmatprep.mubr.f32.mxu0 %v231_v52  ;;  %792 = vmatprep.mubr.f32.mxu1 %v247_v53 }
  0xb2   : > { %769 = vmatmul.mubr.f32.gmra.mrb[14].mxu0 %v232_v54  ;;  %793 = vmatmul.mubr.f32.gmra.mrb[14].mxu1 %v248_v55 }
 0x169   : > { %v749_v56 = vpop.f32.mrb[0].mxu0  ;;  %v773_v57 = vpop.f32.mrb[0].mxu1 }
 0x16a   : > { %491 = vst [vmem:[%s1531_s12 + $0x8] sm:$0xff] %v749_v56  ;;  %507 = vst [vmem:[%s1531_s12 + $0x88] sm:$0xff] %v773_v57  ;;  %v331_v58 = vpop.f32.mrb[1].mxu0  ;;  %v411_v59 = vpop.f32.mrb[1].mxu1 }
 0x16b   : > { %490 = vst [vmem:[%s1531_s12] sm:$0xff] %v331_v58  ;;  %506 = vst [vmem:[%s1531_s12 + $0x80] sm:$0xff] %v411_v59 }
 0x16d   : > { %v752_v60 = vpop.f32.mrb[2].mxu0  ;;  %v776_v61 = vpop.f32.mrb[2].mxu1 }
 0x16e   : > { %493 = vst [vmem:[%s1531_s12 + $0x18] sm:$0xff] %v752_v60  ;;  %509 = vst [vmem:[%s1531_s12 + $0x98] sm:$0xff] %v776_v61  ;;  %v341_v62 = vpop.f32.mrb[3].mxu0  ;;  %v421_v63 = vpop.f32.mrb[3].mxu1 }
 0x16f   : > { %492 = vst [vmem:[%s1531_s12 + $0x10] sm:$0xff] %v341_v62  ;;  %508 = vst [vmem:[%s1531_s12 + $0x90] sm:$0xff] %v421_v63 }
 0x171   : > { %v755_v0 = vpop.f32.mrb[4].mxu0  ;;  %v779_v1 = vpop.f32.mrb[4].mxu1 }
 0x172   : > { %495 = vst [vmem:[%s1531_s12 + $0x28] sm:$0xff] %v755_v0  ;;  %511 = vst [vmem:[%s1531_s12 + $0xa8] sm:$0xff] %v779_v1  ;;  %v351_v2 = vpop.f32.mrb[5].mxu0  ;;  %v431_v3 = vpop.f32.mrb[5].mxu1 }
 0x173   : > { %494 = vst [vmem:[%s1531_s12 + $0x20] sm:$0xff] %v351_v2  ;;  %510 = vst [vmem:[%s1531_s12 + $0xa0] sm:$0xff] %v431_v3 }
 0x175   : > { %v758_v4 = vpop.f32.mrb[6].mxu0  ;;  %v782_v5 = vpop.f32.mrb[6].mxu1 }
 0x176   : > { %497 = vst [vmem:[%s1531_s12 + $0x38] sm:$0xff] %v758_v4  ;;  %513 = vst [vmem:[%s1531_s12 + $0xb8] sm:$0xff] %v782_v5  ;;  %v361_v6 = vpop.f32.mrb[7].mxu0  ;;  %v441_v7 = vpop.f32.mrb[7].mxu1 }
 0x177   : > { %496 = vst [vmem:[%s1531_s12 + $0x30] sm:$0xff] %v361_v6  ;;  %512 = vst [vmem:[%s1531_s12 + $0xb0] sm:$0xff] %v441_v7 }
 0x179   : > { %v761_v8 = vpop.f32.mrb[8].mxu0  ;;  %v785_v9 = vpop.f32.mrb[8].mxu1 }
 0x17a   : > { %499 = vst [vmem:[%s1531_s12 + $0x48] sm:$0xff] %v761_v8  ;;  %515 = vst [vmem:[%s1531_s12 + $0xc8] sm:$0xff] %v785_v9  ;;  %v371_v10 = vpop.f32.mrb[9].mxu0  ;;  %v451_v11 = vpop.f32.mrb[9].mxu1 }
 0x17b   : > { %498 = vst [vmem:[%s1531_s12 + $0x40] sm:$0xff] %v371_v10  ;;  %514 = vst [vmem:[%s1531_s12 + $0xc0] sm:$0xff] %v451_v11 }
 0x17d   : > { %v764_v12 = vpop.f32.mrb[10].mxu0  ;;  %v788_v13 = vpop.f32.mrb[10].mxu1 }
 0x17e   : > { %501 = vst [vmem:[%s1531_s12 + $0x58] sm:$0xff] %v764_v12  ;;  %517 = vst [vmem:[%s1531_s12 + $0xd8] sm:$0xff] %v788_v13  ;;  %v381_v14 = vpop.f32.mrb[11].mxu0  ;;  %v461_v15 = vpop.f32.mrb[11].mxu1 }
 0x17f   : > { %500 = vst [vmem:[%s1531_s12 + $0x50] sm:$0xff] %v381_v14  ;;  %516 = vst [vmem:[%s1531_s12 + $0xd0] sm:$0xff] %v461_v15 }
 0x181   : > { %v767_v16 = vpop.f32.mrb[12].mxu0  ;;  %v791_v17 = vpop.f32.mrb[12].mxu1 }
 0x182   : > { %503 = vst [vmem:[%s1531_s12 + $0x68] sm:$0xff] %v767_v16  ;;  %519 = vst [vmem:[%s1531_s12 + $0xe8] sm:$0xff] %v791_v17  ;;  %v391_v18 = vpop.f32.mrb[13].mxu0  ;;  %v471_v19 = vpop.f32.mrb[13].mxu1 }
 0x183   : > { %502 = vst [vmem:[%s1531_s12 + $0x60] sm:$0xff] %v391_v18  ;;  %518 = vst [vmem:[%s1531_s12 + $0xe0] sm:$0xff] %v471_v19 }
 0x185   : > { %v770_v20 = vpop.f32.mrb[14].mxu0  ;;  %v794_v21 = vpop.f32.mrb[14].mxu1 }
 0x186   : > { %505 = vst [vmem:[%s1531_s12 + $0x78] sm:$0xff] %v770_v20  ;;  %521 = vst [vmem:[%s1531_s12 + $0xf8] sm:$0xff] %v794_v21  ;;  %v401_v22 = vpop.f32.mrb[15].mxu0  ;;  %v481_v23 = vpop.f32.mrb[15].mxu1 }
 0x187   : > { %504 = vst [vmem:[%s1531_s12 + $0x70] sm:$0xff] %v401_v22  ;;  %520 = vst [vmem:[%s1531_s12 + $0xf0] sm:$0xff] %v481_v23 }
 0x188   : > { %1054 = shalt.err (!%p1051_p11)
}
 0x189   : > { %s1055_s28 = scalar_lea.hbm %s1567_s23, 4096  ;;  %s1059_s26 = scalar_lea.hbm %s1699_s8, 24576 }
 0x18a   : > { %p1056_p2 = scmp.ne.s32.totalorder %s1567_s23, %s1055_s28  ;;  %p1060_p7 = scmp.lt.u32.totalorder %s1567_s23, %s1699_s8 }
 0x18b   : > { %p1061_p13 = scmp.lt.u32.totalorder %s1059_s26, %s1055_s28  ;;  %p1063_p1 = scmp.lt.u32.totalorder %s1055_s28, %s1567_s23 }
 0x18c   : > { %p1057_p5 = pnand %p1056_p2, %p1700_p12 }
 0x18d   : > { %p1062_p6 = por %p1061_p13, %p1060_p7 }
 0x18e   : > { %p1058_p3 = pneg %p1057_p5 }
 0x18f   : > { %p1064_p9 = por %p1063_p1, %p1062_p6 }
 0x191   : > { %p1065_p0 = pnand %p1064_p9, %p1058_p3 }
 0x193   : > { %1068 = shalt.err (!%p1065_p0)
}
 0x194   : > { %s1199_s24 = smov 128   ;;  %s1200_s4 = smov 384  }
 0x195   : > { %s1201_s15 = smov 8  }
 0x196   : > { %848 = dma.vmem_to_hbm [thread:$0]  (%p1700_p12), %s1569_s29, 4096, %s1567_s23, %s1577_s5, %s1199_s24, %s1200_s4, %s1201_s15  }
 0x197 PF: > { %p862_p4 = scmp.ge.s32.totalorder %s1191_s22, 2  ;;  %s553_s25 = sand.u32 1, %s1139_s9  }
 0x198   : > { %p1701_p10 = scmp.ne.s32.totalorder %s1689_s27, 0  ;;  %s554_s2 = scalar_lea.sflag [#allocation4], %s553_s25 }
 0x19a   : > { %p858_p8 = pnand %p862_p4, %p1701_p10 }
 0x19c   : > { %1134 = dma.done.wait (!%p858_p8), %s554_s2, 4096  }
 0x19d   : > { %1136 = vsyncadd (!%p858_p8), %s554_s2, 4294963200  ;;  %s21_s22 = sadd.s32 1, %s1191_s22   ;;  %s1703_s29 = sld [smem:[#allocation15_spill]] }
 0x19e   : > { %p1606_p11 = scmp.ge.s32.totalorder %s21_s22, 8   ;;  %s1704_s19 = sld [smem:[#allocation12_spill]] }
 0x19f   : > { %s1705_s27 = sld [smem:[#allocation13_spill]]  ;;  %s1706_s21 = sld [smem:[#allocation14_spill]] }
 0x1a0   : > { %s1707_s9 = smov %s1143_s10  ;;  %s1708_s10 = smov %s1147_s11 }
 0x1a1   : > { %s1709_s11 = smov %s1411_s30  ;;  %s1710_s12 = smov %s1155_s13 }
 0x1a2   : > { %s1711_s13 = smov %s1159_s14  ;;  %s1713_s15 = smov %s1167_s16 }
 0x1a3   : > { %s1712_s14 = smov %s1703_s29  ;;  %s1714_s16 = smov %s1171_s17 }
 0x1a4   : > { %s1715_s17 = smov %s1408_s0  ;;  %s1716_s18 = smov %s1183_s20 }
 0x1a5   : > { %s1717_s20 = smov %s1705_s27  ;;  %20 = sbr.rel (!%p1606_p11) target bundleno = 15 (0xf), region = 86 }
 0x1ac   :  { %559 = vsyncpa [#allocation3], 1 }
 0x1ad   :  { %561 = vsyncpa [#allocation3 + $0x1], 1 }
 0x1ae   :  { %562 = vsyncpa [#allocation6], 1 }
 0x1af   :  { %564 = vsyncpa [#allocation6 + $0x1], 1 }
 0x1b0   :  { %565 = vsyncpa [#allocation4], 1 }
 0x1b1   :  { %567 = vsyncpa [#allocation4 + $0x1], 1 }

</bundles_post_ra>
